<compile_context>
chip_gen: v7x
topology: tpu7x:2x2x1
jax: 0.10.0
libtpu: 0.0.40
codegen_flags: <defaults>
</compile_context>

<pallas_src>
import functools

import jax
import jax.numpy as jnp
from jax.experimental import pallas as pl
from jax.experimental.pallas import tpu as pltpu

NEG_SLOPE = 0.01  # F.leaky_relu default


def mlp_kernel(x_ref, w1_ref, b1_ref, w2_ref, b2_ref, w3_ref, b3_ref, o_ref):
    x = x_ref[...]                                               # (TB, 30) bf16
    # Layer 1: Linear(30 -> 64), bf16 MXU matmul, f32 accumulation.
    h = jnp.dot(x, w1_ref[...], preferred_element_type=jnp.float32) + b1_ref[...]
    h = jnp.maximum(h, NEG_SLOPE * h)                            # leaky_relu
    # Layer 2: Linear(64 -> 64)
    h = jnp.dot(h.astype(jnp.bfloat16), w2_ref[...],
                preferred_element_type=jnp.float32) + b2_ref[...]
    h = jnp.maximum(h, NEG_SLOPE * h)                            # leaky_relu
    # Layer 3: Linear(64 -> 1) as a lane reduction (w3_ref is the (1, 64) row);
    # keeps the MXU free and avoids the padded N=1 matmul result path.
    y = jnp.sum(h * w3_ref[...], axis=-1, keepdims=True) + b3_ref[...]
    o_ref[...] = jax.nn.sigmoid(y)


def _round_up(n, m):
    return ((n + m - 1) // m) * m


@functools.partial(jax.jit, static_argnames=("tile_b",))
def dnn_forward_pallas(x, params, tile_b=1024):
    """Pallas forward pass. x: (B, 30) float32. Returns (B, 1) float32."""
    w1, b1, w2, b2, w3, b3 = params
    B, F = x.shape

    # Batch tile: multiple of 16 (bf16 sublane packing). Weights stay resident;
    # per-tile VMEM ~= 2*(tb*128*2 [x bf16] + tb*128*4 [out f32]) bytes, which is
    # well under the 32 MiB scoped VMEM limit on v5e/v6e/v7x for tb <= 2048.
    tb = min(tile_b, _round_up(B, 16))
    Bp = _round_up(B, tb)
    num_blocks = Bp // tb

    x_bf = x.astype(jnp.bfloat16)
    if Bp != B:
        x_bf = jnp.pad(x_bf, ((0, Bp - B), (0, 0)))

    w1_bf = w1.astype(jnp.bfloat16)
    w2_bf = w2.astype(jnp.bfloat16)
    w3_row = w3.reshape(1, -1).astype(jnp.float32)   # (1, 64) for lane reduction
    b3_r = b3.reshape(1, 1).astype(jnp.float32)

    def const_spec(shape):
        # Weight / bias stays on the same block for every grid step -> resident.
        return pl.BlockSpec(shape, lambda i, _s=shape: tuple(0 for _ in _s))

    out = pl.pallas_call(
        mlp_kernel,
        out_shape=jax.ShapeDtypeStruct((Bp, 1), jnp.float32),
        grid_spec=pltpu.PrefetchScalarGridSpec(
            num_scalar_prefetch=0,
            grid=(num_blocks,),
            in_specs=[
                pl.BlockSpec((tb, F), lambda i: (i, 0)),          # streamed x
                const_spec(w1_bf.shape), const_spec(b1.shape),
                const_spec(w2_bf.shape), const_spec(b2.shape),
                const_spec(w3_row.shape), const_spec(b3_r.shape),
            ],
            out_specs=pl.BlockSpec((tb, 1), lambda i: (i, 0)),
        ),
        compiler_params=pltpu.CompilerParams(
            dimension_semantics=("parallel",)),   # shard batch tiles across TCs (v7x)
    )(x_bf, w1_bf, b1, w2_bf, b2, w3_row, b3_r)

    return out[:B]


def dnn_forward(x, params, small_batch_threshold=2048, tile_b=1024):
    # At tiny batch sizes the pallas_call launch / single-step overhead dominates;
    # let XLA fuse the three matmuls instead.
    if x.shape[0] < small_batch_threshold:
        return reference_forward(x, params)
    return dnn_forward_pallas(x, params, tile_b=tile_b)


def init_params(key):
    # Mimics torch.nn.Linear init: uniform(-1/sqrt(fan_in), 1/sqrt(fan_in)).
    # Weights stored transposed vs torch ((in, out)) so the kernel does x @ W + b.
    def linear(key, fan_in, fan_out):
        kw, kb = jax.random.split(key)
        bound = 1.0 / jnp.sqrt(float(fan_in))
        w = jax.random.uniform(kw, (fan_in, fan_out), jnp.float32, -bound, bound)
        b = jax.random.uniform(kb, (1, fan_out), jnp.float32, -bound, bound)
        return w, b

    k1, k2, k3 = jax.random.split(key, 3)
    w1, b1 = linear(k1, 30, 64)
    w2, b2 = linear(k2, 64, 64)
    w3, b3 = linear(k3, 64, 1)
    return (w1, b1, w2, b2, w3, b3)


def reference_forward(x, params):
    w1, b1, w2, b2, w3, b3 = params
    h = x @ w1 + b1
    h = jnp.where(h > 0, h, NEG_SLOPE * h)
    h = h @ w2 + b2
    h = jnp.where(h > 0, h, NEG_SLOPE * h)
    return jax.nn.sigmoid(h @ w3 + b3)


if __name__ == "__main__":
    key = jax.random.PRNGKey(0)
    kx1, kx2, kp = jax.random.split(key, 3)
    params = init_params(kp)

    # Small case (module's natural shape): B=8, 30 features. Exercise the
    # Pallas kernel directly (single padded tile).
    x_small = jax.random.normal(kx1, (8, 30), jnp.float32)
    out_small = dnn_forward_pallas(x_small, params)
    jax.block_until_ready(out_small)
    ref_small = reference_forward(x_small, params)
    assert out_small.shape == (8, 1)
    # bf16 matmul operands with f32 accumulation -> loosened tolerance.
    assert jnp.allclose(out_small, ref_small, atol=2e-2, rtol=2e-2)

    # Multi-tile case: B=400 with tile_b=128 -> 4 grid steps (incl. edge padding),
    # exercising the pipelined / parallel batch axis.
    x_big = jax.random.normal(kx2, (400, 30), jnp.float32)
    out_big = dnn_forward_pallas(x_big, params, tile_b=128)
    jax.block_until_ready(out_big)
    ref_big = reference_forward(x_big, params)
    assert out_big.shape == (400, 1)
    assert jnp.allclose(out_big, ref_big, atol=2e-2, rtol=2e-2)

    print("KERNEL_OK")
</pallas_src>

<mosaic_0001>
module attributes {stable_mosaic.version = 11 : i64} {
  func.func @mlp_kernel(%arg0: i32, %arg1: memref<16x30xbf16, #tpu.memory_space<vmem>>, %arg2: memref<30x64xbf16, #tpu.memory_space<vmem>>, %arg3: memref<1x64xf32, #tpu.memory_space<vmem>>, %arg4: memref<64x64xbf16, #tpu.memory_space<vmem>>, %arg5: memref<1x64xf32, #tpu.memory_space<vmem>>, %arg6: memref<1x64xf32, #tpu.memory_space<vmem>>, %arg7: memref<1x1xf32, #tpu.memory_space<vmem>>, %arg8: memref<16x1xf32, #tpu.memory_space<vmem>>) attributes {dimension_semantics = [#tpu.dimension_semantics<parallel>], iteration_bounds = array<i64: 1>, scalar_prefetch = 0 : i64, scratch_operands = 0 : i64, tpu.core_type = #tpu.core_type<tc>, window_params = [{transform_indices = @transform_0, window_bounds = array<i64: 16, 30>}, {pipeline_mode = #tpu.pipeline_mode<synchronous>, transform_indices = @transform_1, window_bounds = array<i64: 30, 64>}, {pipeline_mode = #tpu.pipeline_mode<synchronous>, transform_indices = @transform_2, window_bounds = array<i64: 1, 64>}, {pipeline_mode = #tpu.pipeline_mode<synchronous>, transform_indices = @transform_3, window_bounds = array<i64: 64, 64>}, {pipeline_mode = #tpu.pipeline_mode<synchronous>, transform_indices = @transform_4, window_bounds = array<i64: 1, 64>}, {pipeline_mode = #tpu.pipeline_mode<synchronous>, transform_indices = @transform_5, window_bounds = array<i64: 1, 64>}, {pipeline_mode = #tpu.pipeline_mode<synchronous>, transform_indices = @transform_6, window_bounds = array<i64: 1, 1>}, {transform_indices = @transform_7, window_bounds = array<i64: 16, 1>}]} {
    %c0 = arith.constant 0 : index
    %c0_0 = arith.constant 0 : index
    %0 = vector.load %arg1[%c0, %c0_0] : memref<16x30xbf16, #tpu.memory_space<vmem>>, vector<16x30xbf16>
    %c0_1 = arith.constant 0 : index
    %c0_2 = arith.constant 0 : index
    %1 = vector.load %arg2[%c0_1, %c0_2] : memref<30x64xbf16, #tpu.memory_space<vmem>>, vector<30x64xbf16>
    %cst = arith.constant dense<0.000000e+00> : vector<16x64xf32>
    %2 = tpu.matmul %0, %1, %cst {dimension_numbers = #tpu.dot_dimension_numbers<[1], [0], [0], [1], [0, 0, 1, 1], [], []>} : vector<16x30xbf16>, vector<30x64xbf16>, vector<16x64xf32> -> vector<16x64xf32>
    %c0_3 = arith.constant 0 : index
    %c0_4 = arith.constant 0 : index
    %3 = vector.load %arg3[%c0_3, %c0_4] : memref<1x64xf32, #tpu.memory_space<vmem>>, vector<1x64xf32>
    %4 = vector.broadcast %3 : vector<1x64xf32> to vector<16x64xf32>
    %5 = arith.addf %2, %4 : vector<16x64xf32>
    %cst_5 = arith.constant 0.00999999977 : f32
    %6 = vector.broadcast %cst_5 : f32 to vector<16x64xf32>
    %7 = arith.mulf %6, %5 : vector<16x64xf32>
    %8 = arith.maximumf %5, %7 : vector<16x64xf32>
    %9 = arith.truncf %8 : vector<16x64xf32> to vector<16x64xbf16>
    %c0_6 = arith.constant 0 : index
    %c0_7 = arith.constant 0 : index
    %10 = vector.load %arg4[%c0_6, %c0_7] : memref<64x64xbf16, #tpu.memory_space<vmem>>, vector<64x64xbf16>
    %cst_8 = arith.constant dense<0.000000e+00> : vector<16x64xf32>
    %11 = tpu.matmul %9, %10, %cst_8 {dimension_numbers = #tpu.dot_dimension_numbers<[1], [0], [0], [1], [0, 0, 1, 1], [], []>} : vector<16x64xbf16>, vector<64x64xbf16>, vector<16x64xf32> -> vector<16x64xf32>
    %c0_9 = arith.constant 0 : index
    %c0_10 = arith.constant 0 : index
    %12 = vector.load %arg5[%c0_9, %c0_10] : memref<1x64xf32, #tpu.memory_space<vmem>>, vector<1x64xf32>
    %13 = vector.broadcast %12 : vector<1x64xf32> to vector<16x64xf32>
    %14 = arith.addf %11, %13 : vector<16x64xf32>
    %cst_11 = arith.constant 0.00999999977 : f32
    %15 = vector.broadcast %cst_11 : f32 to vector<16x64xf32>
    %16 = arith.mulf %15, %14 : vector<16x64xf32>
    %17 = arith.maximumf %14, %16 : vector<16x64xf32>
    %c0_12 = arith.constant 0 : index
    %c0_13 = arith.constant 0 : index
    %18 = vector.load %arg6[%c0_12, %c0_13] : memref<1x64xf32, #tpu.memory_space<vmem>>, vector<1x64xf32>
    %19 = vector.broadcast %18 : vector<1x64xf32> to vector<16x64xf32>
    %20 = arith.mulf %17, %19 : vector<16x64xf32>
    %cst_14 = arith.constant dense<0.000000e+00> : vector<16xf32>
    %21 = vector.multi_reduction <add>, %20, %cst_14 [1] : vector<16x64xf32> to vector<16xf32>
    %22 = vector.shape_cast %21 : vector<16xf32> to vector<16x1xf32>
    %c0_15 = arith.constant 0 : index
    %c0_16 = arith.constant 0 : index
    %23 = vector.load %arg7[%c0_15, %c0_16] : memref<1x1xf32, #tpu.memory_space<vmem>>, vector<1x1xf32>
    %24 = vector.broadcast %23 : vector<1x1xf32> to vector<16x1xf32>
    %25 = arith.addf %22, %24 : vector<16x1xf32>
    %26 = arith.negf %25 : vector<16x1xf32>
    %27 = math.exp %26 : vector<16x1xf32>
    %cst_17 = arith.constant 1.000000e+00 : f32
    %28 = vector.broadcast %cst_17 : f32 to vector<16x1xf32>
    %29 = arith.addf %28, %27 : vector<16x1xf32>
    %30 = arith.divf %28, %29 : vector<16x1xf32>
    %c0_18 = arith.constant 0 : index
    %c0_19 = arith.constant 0 : index
    %31 = vector.load %arg8[%c0_18, %c0_19] : memref<16x1xf32, #tpu.memory_space<vmem>>, vector<16x1xf32>
    tpu.vector_store %arg8[%c0_18, %c0_19], %30 {strides = array<i32>} : memref<16x1xf32, #tpu.memory_space<vmem>>, vector<16x1xf32>,
    return
  }
  func.func @transform_0(%arg0: i32) -> (i32, i32) {
    %c0_i32 = arith.constant 0 : i32
    %c0_i32_0 = arith.constant 0 : i32
    return %arg0, %c0_i32 : i32, i32
  }
  func.func @transform_1(%arg0: i32) -> (i32, i32) {
    %c0_i32 = arith.constant 0 : i32
    %c0_i32_0 = arith.constant 0 : i32
    %c0_i32_1 = arith.constant 0 : i32
    return %c0_i32, %c0_i32_0 : i32, i32
  }
  func.func @transform_2(%arg0: i32) -> (i32, i32) {
    %c0_i32 = arith.constant 0 : i32
    %c0_i32_0 = arith.constant 0 : i32
    %c0_i32_1 = arith.constant 0 : i32
    return %c0_i32, %c0_i32_0 : i32, i32
  }
  func.func @transform_3(%arg0: i32) -> (i32, i32) {
    %c0_i32 = arith.constant 0 : i32
    %c0_i32_0 = arith.constant 0 : i32
    %c0_i32_1 = arith.constant 0 : i32
    return %c0_i32, %c0_i32_0 : i32, i32
  }
  func.func @transform_4(%arg0: i32) -> (i32, i32) {
    %c0_i32 = arith.constant 0 : i32
    %c0_i32_0 = arith.constant 0 : i32
    %c0_i32_1 = arith.constant 0 : i32
    return %c0_i32, %c0_i32_0 : i32, i32
  }
  func.func @transform_5(%arg0: i32) -> (i32, i32) {
    %c0_i32 = arith.constant 0 : i32
    %c0_i32_0 = arith.constant 0 : i32
    %c0_i32_1 = arith.constant 0 : i32
    return %c0_i32, %c0_i32_0 : i32, i32
  }
  func.func @transform_6(%arg0: i32) -> (i32, i32) {
    %c0_i32 = arith.constant 0 : i32
    %c0_i32_0 = arith.constant 0 : i32
    %c0_i32_1 = arith.constant 0 : i32
    return %c0_i32, %c0_i32_0 : i32, i32
  }
  func.func @transform_7(%arg0: i32) -> (i32, i32) {
    %c0_i32 = arith.constant 0 : i32
    %c0_i32_0 = arith.constant 0 : i32
    return %arg0, %c0_i32 : i32, i32
  }
}

</mosaic_0001>

<bundles_post_ra>
// kernel: dnn_forward_pallas.1
= control target key start
LH: loop header
LB: loop body
LE: loop exit
PB: predicated region body
PF: predicated region fallthrough
CT: control target
= control target key end

     0   :  { %v303_v0 = vmov 0.0   ;;  %vm62_vm0 = vcmask 1046528   ;;  %vm304_vm1 = vmmov 0   ;;  %vm58_vm2 = vcmask 244736   ;;  %s387_s1 = inlined_call_operand.vmem [shape: bf16[30,64], index: 1, kind: input, shape index: {}]   ;;  %s388_s3 = inlined_call_operand.vmem [shape: bf16[64,64], index: 3, kind: input, shape index: {}]   ;;  %s389_s0 = inlined_call_operand.vmem [shape: bf16[16,30], index: 0, kind: input, shape index: {}]   ;;  %s390_s2 = inlined_call_operand.vmem [shape: f32[1,64], index: 2, kind: input, shape index: {}]   ;;  %s391_s6 = inlined_call_operand.<no memory space> [shape: f32[1,1], index: 6, kind: input, shape index: {}]   ;;  %s392_s4 = inlined_call_operand.vmem [shape: f32[1,64], index: 4, kind: input, shape index: {}]   ;;  %s393_s5 = inlined_call_operand.vmem [shape: f32[1,64], index: 5, kind: input, shape index: {}]   ;;  %s394_s7 = inlined_call_operand.vmem [shape: f32[16,1], index: 7, kind: output, shape index: {}]  }
   0x1   :  { %266 = vmatprep.subr.bf16.mxu0 %v303_v0  ;;  %v288_v1 = vld [vmem:[%s387_s1] sm:$0xff]   ;;  %270 = vmatprep.mubr.msk.bf16.mxu0 %vm304_vm1, %v303_v0  ;;  %v289_v2 = vld [vmem:[%s387_s1 + $0x8] sm:$0x7f]   ;;  %v293_v7 = vld [vmem:[%s388_s3 + $0x10] sm:$0xff]   ;;  %vm151_vm3 = vcmask 523264   ;;  %v12_v21 = vstv %s391_s6  ;;  %vm236_vm4 = vcmask 7168  }
   0x2   :  { %274 = vmatprep.subr.bf16.mxu1 %v303_v0  ;;  %282 = vmatprep.mubr.msk.bf16.mxu1 %vm304_vm1, %v303_v0  ;;  %v64_v3 = vsel %vm62_vm0, %v289_v2, 0  ;;  %v291_v4 = vld [vmem:[%s388_s3] sm:$0xff]   ;;  %v292_v6 = vld [vmem:[%s388_s3 + $0x8] sm:$0xff]   ;;  %v294_v8 = vld [vmem:[%s388_s3 + $0x18] sm:$0xff]   ;;  %13 = vst [vmem:[#allocation2] sm:$0x1] %v12_v21 }
   0x3   :  { %267 = vmatpush3.bf16.msra.mxu0 %v288_v1  ;;  %v290_v5 = vld [vmem:[%s389_s0] sm:$0xff]   ;;  %275 = vmatpush3.bf16.msra.mxu1 %v291_v4 }
   0x4   :  { %268 = vmatprep.subr.bf16.mxu0 %v303_v0  ;;  %276 = vmatprep.subr.bf16.mxu1 %v303_v0  ;;  %v243_v9 = vld [vmem:[%s390_s2] ss:$0 sm:$0xff] }
   0x5   :  { %v248_v22 = vld [vmem:[%s392_s4] ss:$0 sm:$0xff] }
   0x6   :  { %v254_v30 = vld [vmem:[%s393_s5] ss:$0 sm:$0xff] }
   0x7   :  { %269 = vmatpush3.bf16.msra.mxu0 %v64_v3  ;;  %277 = vmatpush3.bf16.msra.mxu1 %v292_v6 }
   0x8   :  { %278 = vmatprep.subr.bf16.mxu1 %v303_v0 }
   0x9   :  { %v255_v38 = vld [vmem:[#allocation2] ss:$0 sm:$0xff] }
   0xa   :  { %271 = vmatmul.mubr.msk.bf16.vlgmr.msra.gmra.mrb[0].mxu0 %vm58_vm2, %v290_v5 }
   0xb   :  { %279 = vmatpush3.bf16.msra.mxu1 %v293_v7 }
   0xc   :  { %280 = vmatprep.subr.bf16.mxu1 %v303_v0 }
   0xf   :  { %281 = vmatpush3.bf16.msra.mxu1 %v294_v8 }
  0xdd   :  { %v100_v10 = vpop.f32.mrb[0].mxu0 }
  0xde   :  { %v101_v11 = vadd.f32 %v243_v9, %v100_v10  ;;  %v272_v12 = vpop.f32.mrb[1].mxu0 }
  0xdf   :  { %v103_v13 = vpop.f32.mrb[2].mxu0 }
  0xe0   :  { %v107_v14 = vmul.f32 0.01, %v101_v11  ;;  %v104_v15 = vadd.f32 %v243_v9, %v103_v13  ;;  %v273_v16 = vpop.f32.mrb[3].mxu0 }
  0xe2   :  { %v108_v17 = vmul.f32 0.01, %v104_v15  ;;  %v109_v18 = vmax.f32 %v101_v11, %v107_v14 }
  0xe4   :  { %v110_v19 = vmax.f32 %v104_v15, %v108_v17 }
  0xe6   :  { %v111_v20 = vpack.c.bf16 %v110_v19, %v109_v18 }
  0xe8   :  { %283 = vmatmul.mubr.msk.bf16.vlgmr.msra.gmra.mrb[0].mxu1 %vm151_vm3, %v111_v20 }
 0x1bb   :  { %v189_v23 = vpop.f32.mrb[0].mxu1 }
 0x1bc   :  { %v190_v24 = vadd.f32 %v248_v22, %v189_v23  ;;  %v284_v25 = vpop.f32.mrb[1].mxu1 }
 0x1bd   :  { %v192_v26 = vpop.f32.mrb[2].mxu1 }
 0x1be   :  { %v196_v27 = vmul.f32 0.01, %v190_v24  ;;  %v193_v28 = vadd.f32 %v248_v22, %v192_v26  ;;  %v285_v29 = vpop.f32.mrb[3].mxu1 }
 0x1c0   :  { %v198_v31 = vmax.f32 %v190_v24, %v196_v27  ;;  %v197_v32 = vmul.f32 0.01, %v193_v28 }
 0x1c2   :  { %v199_v33 = vmax.f32 %v193_v28, %v197_v32  ;;  %v207_v34 = vmul.f32 %v254_v30, %v198_v31 }
 0x1c4   :  { %v209_v35 = vsel %vm151_vm3, %v207_v34, 0.0  ;;  %v208_v36 = vmul.f32 %v254_v30, %v199_v33 }
 0x1c5   :  { %210 = vadd.xlane.f32.xlu0 %v209_v35 }
 0x1c6   :  { %v212_v37 = vsel %vm151_vm3, %v208_v36, 0.0 }
 0x1c9   :  { %213 = vadd.xlane.f32.xlu0 %v212_v37 }
 0x252   :  { %v211_v39 = vpop.xlane.xlu0 %210 }
 0x253   :  { %v222_v40 = vadd.f32 %v255_v38, %v211_v39 }
 0x255   :  { %v256_v41 = vmul.f32 -1.442695, %v222_v40 }
 0x256   :  { %v214_v42 = vpop.xlane.xlu0 %213 }
 0x257   :  { %295 = vpow2.f32 %v256_v41  ;;  %v223_v43 = vadd.f32 %v255_v38, %v214_v42 }
 0x259   :  { %v257_v44 = vmul.f32 -1.442695, %v223_v43 }
 0x25b   :  { %297 = vpow2.f32 %v257_v44 }
 0x261   :  { %v296_v45 = vpop.eup %295 }
 0x262   :  { %v230_v46 = vadd.f32 1.0, %v296_v45 }
 0x264   :  { %299 = vrcp.f32 %v230_v46 }
 0x265   :  { %v298_v47 = vpop.eup %297 }
 0x266   :  { %v231_v48 = vadd.f32 1.0, %v298_v47 }
 0x268   :  { %301 = vrcp.f32 %v231_v48 }
 0x26e   :  { %v300_v49 = vpop.eup %299 }
 0x26f   :  { %237 = vst.msk [vmem:[%s394_s7] sm:$0xff] %vm236_vm4, %v300_v49 }
 0x272   :  { %v302_v50 = vpop.eup %301 }
 0x273   :  { %238 = vst.msk [vmem:[%s394_s7 + $0x8] sm:$0xff] %vm236_vm4, %v302_v50 }

</bundles_post_ra>
